<compile_context>
chip_gen: v7x
topology: tpu7x:2x2x1
jax: 0.10.0
libtpu: 0.0.40
codegen_flags: <defaults>
</compile_context>

<pallas_src>
import math
from functools import partial

import jax
import jax.numpy as jnp
from jax.experimental import pallas as pl
from jax.experimental.pallas import tpu as pltpu


def _patchify_matmul_kernel(p_ref, w_ref, b_ref, o_ref):
    # p_ref: (1, D, TP)   patches tile (lane-dense in TP)
    # w_ref: (Cout, D)    resident weight
    # b_ref: (Cout, 1)    resident bias (f32)
    # o_ref: (1, Cout, TP)
    acc = jnp.dot(w_ref[...], p_ref[0], preferred_element_type=jnp.float32)
    o_ref[0] = (acc + b_ref[...]).astype(o_ref.dtype)


def downsample_forward(x, weight, bias, kernel_size, *, tile_p=16384,
                       compute_dtype=None, patches_buffering=None):
    """Equivalent of nn.Conv2d(3, Cout, K, stride=K)(x) for NCHW x."""
    N, Cin, H, W = x.shape
    K = kernel_size
    Cout = weight.shape[0]
    assert Cin == weight.shape[1] and weight.shape[2] == K and weight.shape[3] == K
    assert H % K == 0 and W % K == 0
    Ho, Wo = H // K, W // K
    D = Cin * K * K
    HoWo = Ho * Wo

    out_dtype = x.dtype
    if compute_dtype is not None:
        # bf16 feed: halves the dominant HBM read; accumulation stays f32.
        x = x.astype(compute_dtype)
        weight = weight.astype(compute_dtype)

    # Patchify: x (N,Cin,H,W) -> (N, D, Ho*Wo), D ordered (c, kh, kw) to match
    # weight.reshape(Cout, D).  One fused XLA transpose pass; allow_input_fusion
    # below lets XLA fold it into the pallas input DMA when it can.
    patches = (
        x.reshape(N, Cin, Ho, K, Wo, K)
        .transpose(0, 1, 3, 5, 2, 4)
        .reshape(N, D, HoWo)
    )
    w_mat = weight.reshape(Cout, D)
    b_col = bias.reshape(Cout, 1).astype(jnp.float32)

    # Lane tile over Ho*Wo: either the full axis (small outputs; block == full
    # dim satisfies the (8,128) rule) or a multiple of 128 lanes.  No padding —
    # the ragged final block is masked by Pallas.
    if tile_p >= HoWo:
        tp = HoWo
    else:
        tp = max(128, (tile_p // 128) * 128)
    n_tiles = pl.cdiv(HoWo, tp)
    grid = (N, n_tiles)

    in_item = jnp.dtype(patches.dtype).itemsize
    out_item = jnp.dtype(out_dtype).itemsize

    # VMEM budget: double-buffered patches + output blocks, resident weight/bias.
    patch_block = D * tp * in_item
    out_block = Cout * tp * out_item
    vmem_need = 2 * (patch_block + out_block) + Cout * D * in_item + Cout * 4
    vmem_limit = min(max(2 * vmem_need + (8 << 20), 32 << 20), 48 << 20)

    cost = pl.CostEstimate(
        flops=2 * N * HoWo * D * Cout,
        transcendentals=0,
        bytes_accessed=(N * D * HoWo * in_item + Cout * D * in_item + Cout * 4
                        + N * Cout * HoWo * out_item),
    )

    patches_spec_kwargs = {}
    if patches_buffering is not None:
        # Deepen pipelining on the one streaming input only (weight/bias stay at
        # the default); use if DMA is still exposed after raising tile_p.
        patches_spec_kwargs["pipeline_mode"] = pl.Buffered(patches_buffering)

    out_flat = pl.pallas_call(
        _patchify_matmul_kernel,
        out_shape=jax.ShapeDtypeStruct((N, Cout, HoWo), out_dtype),
        grid=grid,
        in_specs=[
            pl.BlockSpec((1, D, tp), lambda n, j: (n, 0, j),
                         **patches_spec_kwargs),
            pl.BlockSpec((Cout, D), lambda n, j: (0, 0)),   # resident weight
            pl.BlockSpec((Cout, 1), lambda n, j: (0, 0)),   # resident bias
        ],
        out_specs=pl.BlockSpec((1, Cout, tp), lambda n, j: (n, 0, j)),
        compiler_params=pltpu.CompilerParams(
            dimension_semantics=("parallel", "parallel"),
            vmem_limit_bytes=vmem_limit,
            allow_input_fusion=[True, False, False],
        ),
        cost_estimate=cost,
    )(patches, w_mat, b_col)

    # Free view back to NCHW — no data movement.
    return out_flat.reshape(N, Cout, Ho, Wo)


if __name__ == "__main__":
    # Module config: res_ind=1, total_res=3 -> kernel_size = stride = 4.
    res_ind, total_res, out_channels = 1, 3, 8
    K = 2 ** (total_res - res_ind)

    N, Cin, H, W = 2, 3, 16, 16

    key = jax.random.PRNGKey(0)
    kx, kw, kb = jax.random.split(key, 3)

    x = jax.random.normal(kx, (N, Cin, H, W), dtype=jnp.float32)

    # Deterministic parameter init mimicking PyTorch's Conv2d default
    # (uniform in +/- 1/sqrt(fan_in)).
    fan_in = Cin * K * K
    bound = 1.0 / math.sqrt(fan_in)
    weight = jax.random.uniform(
        kw, (out_channels, Cin, K, K), minval=-bound, maxval=bound,
        dtype=jnp.float32,
    )
    bias = jax.random.uniform(
        kb, (out_channels,), minval=-bound, maxval=bound, dtype=jnp.float32
    )

    # Reference: XLA conv with the same NCHW semantics as PyTorch Conv2d.
    ref = jax.lax.conv_general_dilated(
        x, weight, window_strides=(K, K), padding="VALID",
        dimension_numbers=("NCHW", "OIHW", "NCHW"),
    ) + bias.reshape(1, out_channels, 1, 1)

    # Default (exact f32) path.
    fwd = jax.jit(partial(downsample_forward, kernel_size=K))
    out = jax.block_until_ready(fwd(x, weight, bias))
    assert out.shape == (N, out_channels, H // K, W // K), out.shape
    assert jnp.allclose(out, ref, atol=1e-5, rtol=1e-5), "f32 mismatch vs reference"

    # Optional bf16-feed fast path (f32 accumulate) — looser tolerance.
    fwd_bf16 = jax.jit(partial(downsample_forward, kernel_size=K,
                               compute_dtype=jnp.bfloat16))
    out_bf16 = jax.block_until_ready(fwd_bf16(x, weight, bias))
    assert out_bf16.shape == out.shape and out_bf16.dtype == x.dtype
    assert jnp.allclose(out_bf16, ref, atol=2e-2, rtol=2e-2), "bf16 mismatch vs reference"

    print("KERNEL_OK")
</pallas_src>

<mosaic_0001>
module attributes {stable_mosaic.version = 11 : i64} {
  func.func @_patchify_matmul_kernel(%arg0: i32, %arg1: i32, %arg2: memref<1x48x16xf32, #tpu.memory_space<vmem>>, %arg3: memref<8x48xf32, #tpu.memory_space<vmem>>, %arg4: memref<8x1xf32, #tpu.memory_space<vmem>>, %arg5: memref<1x8x16xf32, #tpu.memory_space<vmem>>) attributes {dimension_semantics = [#tpu.dimension_semantics<parallel>, #tpu.dimension_semantics<parallel>], iteration_bounds = array<i64: 2, 1>, scalar_prefetch = 0 : i64, scratch_operands = 0 : i64, tpu.core_type = #tpu.core_type<tc>, window_params = [{transform_indices = @transform_0, window_bounds = array<i64: 1, 48, 16>}, {pipeline_mode = #tpu.pipeline_mode<synchronous>, transform_indices = @transform_1, window_bounds = array<i64: 8, 48>}, {pipeline_mode = #tpu.pipeline_mode<synchronous>, transform_indices = @transform_2, window_bounds = array<i64: 8, 1>}, {transform_indices = @transform_3, window_bounds = array<i64: 1, 8, 16>}]} {
    %c0 = arith.constant 0 : index
    %c0_0 = arith.constant 0 : index
    %0 = vector.load %arg3[%c0, %c0_0] : memref<8x48xf32, #tpu.memory_space<vmem>>, vector<8x48xf32>
    %c0_1 = arith.constant 0 : index
    %c0_2 = arith.constant 0 : index
    %c0_3 = arith.constant 0 : index
    %1 = vector.load %arg2[%c0_1, %c0_2, %c0_3] : memref<1x48x16xf32, #tpu.memory_space<vmem>>, vector<1x48x16xf32>
    %2 = vector.shape_cast %1 : vector<1x48x16xf32> to vector<48x16xf32>
    %cst = arith.constant dense<0.000000e+00> : vector<8x16xf32>
    %3 = tpu.matmul %0, %2, %cst {dimension_numbers = #tpu.dot_dimension_numbers<[1], [0], [0], [1], [0, 0, 1, 1], [], []>} : vector<8x48xf32>, vector<48x16xf32>, vector<8x16xf32> -> vector<8x16xf32>
    %c0_4 = arith.constant 0 : index
    %c0_5 = arith.constant 0 : index
    %4 = vector.load %arg4[%c0_4, %c0_5] : memref<8x1xf32, #tpu.memory_space<vmem>>, vector<8x1xf32>
    %5 = vector.broadcast %4 : vector<8x1xf32> to vector<8x16xf32>
    %6 = arith.addf %3, %5 : vector<8x16xf32>
    %c0_6 = arith.constant 0 : index
    %c0_7 = arith.constant 0 : index
    %c0_8 = arith.constant 0 : index
    %7 = vector.load %arg5[%c0_6, %c0_7, %c0_8] : memref<1x8x16xf32, #tpu.memory_space<vmem>>, vector<1x8x16xf32>
    %8 = vector.shape_cast %7 : vector<1x8x16xf32> to vector<8x16xf32>
    %9 = vector.shape_cast %6 : vector<8x16xf32> to vector<1x8x16xf32>
    tpu.vector_store %arg5[%c0_6, %c0_7, %c0_8], %9 {strides = array<i32>} : memref<1x8x16xf32, #tpu.memory_space<vmem>>, vector<1x8x16xf32>,
    return
  }
  func.func @transform_0(%arg0: i32, %arg1: i32) -> (i32, i32, i32) {
    %c0_i32 = arith.constant 0 : i32
    %c0_i32_0 = arith.constant 0 : i32
    return %arg0, %c0_i32, %arg1 : i32, i32, i32
  }
  func.func @transform_1(%arg0: i32, %arg1: i32) -> (i32, i32) {
    %c0_i32 = arith.constant 0 : i32
    %c0_i32_0 = arith.constant 0 : i32
    %c0_i32_1 = arith.constant 0 : i32
    return %c0_i32, %c0_i32_0 : i32, i32
  }
  func.func @transform_2(%arg0: i32, %arg1: i32) -> (i32, i32) {
    %c0_i32 = arith.constant 0 : i32
    %c0_i32_0 = arith.constant 0 : i32
    %c0_i32_1 = arith.constant 0 : i32
    return %c0_i32, %c0_i32_0 : i32, i32
  }
  func.func @transform_3(%arg0: i32, %arg1: i32) -> (i32, i32, i32) {
    %c0_i32 = arith.constant 0 : i32
    %c0_i32_0 = arith.constant 0 : i32
    return %arg0, %c0_i32, %arg1 : i32, i32, i32
  }
}

</mosaic_0001>

<bundles_post_ra>
// kernel: downsample_forward.1
= control target key start
LH: loop header
LB: loop body
LE: loop exit
PB: predicated region body
PF: predicated region fallthrough
CT: control target
= control target key end

     0   :  { %s485_s12 = smov 0   ;;  %s487_s13 = smov 0   ;;  %s524_s0 = inlined_call_operand.vmem [shape: f32[2,48,16], index: 0, kind: input, shape index: {}]   ;;  %s525_s1 = inlined_call_operand.vmem [shape: f32[8,48], index: 1, kind: input, shape index: {}]   ;;  %s526_s2 = inlined_call_operand.vmem [shape: f32[8,1], index: 2, kind: input, shape index: {}]   ;;  %s527_s3 = inlined_call_operand.vmem [shape: f32[2,8,16], index: 3, kind: output, shape index: {}]  }
   0x1   :  { %s489_s14 = smov 0  }
   0x2 LB: > { %s25_s15 = sadd.s32 1, %s455_s13  ;;  %p370_p0 = scmp.ge.s32.totalorder %s459_s14, 1  ;;  %s459_s14 = sphi %s489_s14, %s13_s14   ;;  %s455_s13 = sphi %s487_s13, %s529_s13   ;;  %s451_s12 = sphi %s485_s12, %s528_s12  }
   0x3   : > { %p27_p1 = scmp.ge.s32.totalorder %s25_s15, 2  ;;  %p156_p2 = scmp.lt.s32.totalorder %s459_s14, 3 }
   0x5   : > { %s531_s15 = smov (%p27_p1, %s25_s15), 0  ;;  %p157_p3 = pnand %p370_p0, %p156_p2 }
   0x6   : > { %p185_p4 = scmp.lt.s32.totalorder (!%p157_p3), %s451_s12, 1  ;;  %v461_v0 = vmov (!%p157_p3), 0.0|0.0   ;;  %vm462_vm0 = vmmov (!%p157_p3), 0   ;;  %v463_v1 = vmov (!%p157_p3), 0.0   ;;  %v207_v2 = vld [vmem:[%s526_s2] sm:$0xff] (!%p157_p3)  ;;  %v464_v3 = vmov (!%p157_p3), 0  }
   0x7   : > { %160 = sbr.rel (%p157_p3) target bundleno = 247 (0xf7), region = 32  ;;  %398 = vmatprep.subr.bf16.mxu0 (!%p157_p3), %v461_v0  ;;  %395 = vmatprep.mubr.msk.f32.mxu0 (!%p157_p3), %vm462_vm0, %v463_v1  ;;  %v200_v13 = vld [vmem:[%s525_s1] sm:$0xff] (!%p157_p3)  ;;  %vm213_vm1 = vcmask (!%p157_p3), 392192   ;;  %vm287_vm2 = vcmask (!%p157_p3), 130048  }
   0x8   : > { %436 = vset.pattern.permute.xlu0 (!%p157_p3), %v464_v3 }
   0x9   : > { %210 = vperm.xlu0 (!%p157_p3), %436, %v207_v2  }
   0xe   : > { %s533_s12 = smov (!%p185_p4, %s451_s12), 1 }
   0xf   : > { %s407_s18 = smul.u32 48, %s533_s12  ;;  %s372_s24 = sshll.u32 %s533_s12, 3 }
  0x10   : > { %s199_s27 = scalar_lea.vmem %s527_s3, %s372_s24 }
  0x11   : > { %s192_s21 = scalar_lea.vmem %s524_s0, %s407_s18 }
  0x12   : > { %v201_v4 = vld [vmem:[%s192_s21] sm:$0xff]  ;;  %v202_v5 = vld [vmem:[%s192_s21 + $0x8] sm:$0xff]  ;;  %v203_v6 = vld [vmem:[%s192_s21 + $0x10] sm:$0xff] }
  0x13   : > { %v399_v7 = vpack.c.bf16 %v202_v5, %v201_v4  ;;  %v204_v8 = vld [vmem:[%s192_s21 + $0x18] sm:$0xff]  ;;  %v205_v10 = vld [vmem:[%s192_s21 + $0x20] sm:$0xff]  ;;  %v206_v11 = vld [vmem:[%s192_s21 + $0x28] sm:$0xff] }
  0x14   : > { %v402_v9 = vpack.c.bf16 %v204_v8, %v203_v6  ;;  %v405_v12 = vpack.c.bf16 %v206_v11, %v205_v10 }
  0x15   : > { %400 = vmatpush3.bf16.msra.mxu0 %v399_v7 }
  0x16   : > { %401 = vmatprep.subr.bf16.mxu0 %v461_v0 }
  0x19   : > { %403 = vmatpush3.bf16.msra.mxu0 %v402_v9 }
  0x1a   : > { %404 = vmatprep.subr.bf16.mxu0 %v461_v0 }
  0x1d   : > { %406 = vmatpush3.bf16.msra.mxu0 %v405_v12 }
  0x20   : > { %396 = vmatmul.mubr.msk.f32.vlgmr.msra.gmra.mrb[0].mxu0 %vm213_vm1, %v200_v13 }
  0x88   : > { %v211_v14 = vpop.permute.xlu0 %210 }
  0xf3   : > { %v283_v15 = vpop.f32.mrb[0].mxu0 }
  0xf4   : > { %v284_v16 = vadd.f32 %v283_v15, %v211_v14  ;;  %v397_v17 = vpop.f32.mrb[1].mxu0 }
  0xf6   : > { %288 = vst.msk [vmem:[%s199_s27] sm:$0xff] %vm287_vm2, %v284_v16 }
  0xf7 PF: > { %s13_s14 = sadd.s32 1, %s459_s14   ;;  %s528_s12 = smov %s455_s13 }
  0xf8   : > { %p10_p5 = scmp.ge.s32.totalorder %s13_s14, 4   ;;  %s529_s13 = smov %s531_s15 }
  0xfa   :  { %12 = sbr.rel (!%p10_p5) target bundleno = 2 (0x2), region = 62 }

</bundles_post_ra>
